<compile_context>
chip_gen: v7x
topology: tpu7x:2x2x1
jax: 0.10.0
libtpu: 0.0.40
codegen_flags: <defaults>
</compile_context>

<pallas_src>
import functools

import jax
import jax.numpy as jnp
from jax.experimental import pallas as pl
from jax.experimental.pallas import tpu as pltpu


def _round_up(a, b):
    return (a + b - 1) // b * b


def _patch_embed_kernel(x_ref, w_ref, b_ref, o_ref):
    # x_ref: (tm, K) patch tile; w_ref: (K, tn) weight tile; b_ref: (1, tn)
    # f32 bias; o_ref: (tm, tn).  MXU matmul with f32 accumulation + f32 bias.
    acc = jnp.dot(x_ref[...], w_ref[...], preferred_element_type=jnp.float32)
    o_ref[...] = (acc + b_ref[...]).astype(o_ref.dtype)


def prepare_projection(weight, bias, compute_dtype=jnp.bfloat16):
    """(E, C, p, p, p) conv weight -> (K, E) GEMM weight + (1, E) f32 bias row.

    Call this ONCE outside the per-step path and feed the result to
    `patch_embedding_3d_prepared`, so the weight transpose/cast is not
    re-executed on every forward call.
    """
    E = weight.shape[0]
    K = weight.size // E
    w2d = weight.reshape(E, K).T.astype(compute_dtype)   # (K, E), (C,pd,ph,pw) order
    b2d = bias.reshape(1, E).astype(jnp.float32)          # bias added in f32
    return w2d, b2d


@functools.partial(jax.jit, static_argnames=("patch_size", "out_dtype"))
def patch_embedding_3d_prepared(x, w2d, b2d, *, patch_size, out_dtype=None):
    """x: (B, C, D, H, W); w2d: (K, E) prepared weight; b2d: (1, E) f32 bias."""
    B, C, D, H, W = x.shape
    p = patch_size
    K, E = w2d.shape
    Dp, Hp, Wp = D // p, H // p, W // p
    N = Dp * Hp * Wp
    M = B * N
    assert K == C * p * p * p, (K, C, p)

    compute_dtype = w2d.dtype
    out_dtype = x.dtype if out_dtype is None else out_dtype
    in_bytes = jnp.dtype(compute_dtype).itemsize
    out_bytes = jnp.dtype(out_dtype).itemsize

    # --- layout glue: extract non-overlapping patches in (C, pd, ph, pw)
    # feature order (matches Conv3d / OIDHW reduction order).  The bf16 cast
    # fuses into the same transpose pass; allow_input_fusion below lets XLA
    # additionally fuse this producer into the pallas_call operand so the
    # (M, K) patch matrix need not be materialized as a separate HBM pass.
    patches = x.reshape(B, C, Dp, p, Hp, p, Wp, p)
    patches = patches.transpose(0, 2, 4, 6, 1, 3, 5, 7)   # (B, Dp, Hp, Wp, C, p, p, p)
    patches = patches.reshape(M, K).astype(compute_dtype)

    # --- M tiling: large MXU-width tiles, NO padding copy.  Pallas masks the
    # ragged last block when M % tm != 0 (OOB rows feed the MXU but their
    # output rows are never written back).
    if M >= 512:
        tm = 512
    elif M >= 256:
        tm = 256
    else:
        tm = _round_up(M, 16)      # multiple of 16: clean bf16 sublane packing
    grid_m = pl.cdiv(M, tm)

    # --- E tiling: only when the double-buffered weight tile would threaten
    # v7x's 64 MiB VMEM; tn is a multiple of 256 (MXU width) dividing E.
    tn = E
    if K * E * in_bytes > (12 << 20):
        for cand in (1024, 768, 512, 256):
            if E % cand == 0:
                tn = cand
                break
    grid_n = pl.cdiv(E, tn)        # tn always divides E by construction

    # Double-buffered tiles: patches + weight + bias in, output out.
    vmem_need = 2 * (tm * K * in_bytes + K * tn * in_bytes + tn * 4
                     + tm * tn * out_bytes)
    try:
        vmem_cap = int(pltpu.get_tpu_info().vmem_capacity_bytes)
    except Exception:
        vmem_cap = 64 << 20        # v7x-safe fallback
    vmem_limit = int(min(max(vmem_need * 3 // 2 + (2 << 20), 32 << 20),
                         (vmem_cap * 3) // 4))

    cost = pl.CostEstimate(
        flops=2 * M * K * E,
        transcendentals=0,
        bytes_accessed=(M * K + K * E) * in_bytes + M * E * out_bytes + E * 4,
    )

    out2d = pl.pallas_call(
        _patch_embed_kernel,
        out_shape=jax.ShapeDtypeStruct((M, E), out_dtype),
        grid_spec=pltpu.PrefetchScalarGridSpec(
            num_scalar_prefetch=0,
            grid=(grid_m, grid_n),
            in_specs=[
                pl.BlockSpec((tm, K), lambda i, j: (i, 0)),   # streamed patch tile
                pl.BlockSpec((K, tn), lambda i, j: (0, j)),   # weight (resident if tn == E)
                pl.BlockSpec((1, tn), lambda i, j: (0, j)),   # bias row
            ],
            out_specs=pl.BlockSpec((tm, tn), lambda i, j: (i, j)),
        ),
        compiler_params=pltpu.CompilerParams(
            dimension_semantics=("parallel", "parallel"),
            vmem_limit_bytes=vmem_limit,
            allow_input_fusion=[True, False, False],
        ),
        cost_estimate=cost,
    )(patches, w2d, b2d)

    return out2d.reshape(B, N, E)


def patch_embedding_3d(x, weight, bias, *, patch_size,
                       compute_dtype=jnp.bfloat16, out_dtype=None):
    """Convenience entry point matching the PyTorch module.

    x: (B, C, D, H, W); weight: (E, C, p, p, p); bias: (E,). Returns (B, N, E).
    For repeated calls, hoist `prepare_projection` and call
    `patch_embedding_3d_prepared` directly.  Use compute_dtype=jnp.float32 as
    a precision escape hatch for large-K configurations.
    """
    w2d, b2d = prepare_projection(weight, bias, compute_dtype)
    return patch_embedding_3d_prepared(x, w2d, b2d, patch_size=patch_size,
                                       out_dtype=out_dtype)


def _reference(x, weight, bias, patch_size):
    """Pure-JAX reference using conv_general_dilated (== PyTorch Conv3d stride=p)."""
    y = jax.lax.conv_general_dilated(
        x, weight,
        window_strides=(patch_size,) * 3,
        padding="VALID",
        dimension_numbers=("NCDHW", "OIDHW", "NCDHW"),
    ) + bias.reshape(1, -1, 1, 1, 1)
    B, E = y.shape[0], y.shape[1]
    return y.reshape(B, E, -1).transpose(0, 2, 1)          # (B, N, E)


if __name__ == "__main__":
    # Small shapes consistent with the module: in_channels=1, patch_size=8.
    # (embed_dim shrunk 768 -> 128 and spatial 128 -> 16 to keep the test small.)
    B, C, D, H, W = 2, 1, 16, 16, 16
    patch_size = 8
    embed_dim = 128

    key = jax.random.PRNGKey(0)
    kx, kw, kb = jax.random.split(key, 3)
    x = jax.random.normal(kx, (B, C, D, H, W), dtype=jnp.float32)
    weight = jax.random.normal(kw, (embed_dim, C, patch_size, patch_size, patch_size),
                               dtype=jnp.float32) * 0.02
    bias = jax.random.normal(kb, (embed_dim,), dtype=jnp.float32) * 0.02

    out = patch_embedding_3d(x, weight, bias, patch_size=patch_size)
    out = jax.block_until_ready(out)

    ref = _reference(x, weight, bias, patch_size)
    assert out.shape == (B, (D // patch_size) ** 3, embed_dim), out.shape
    # bf16 GEMM inputs (f32 accumulation) vs the f32 conv reference.
    assert jnp.allclose(out, ref, atol=2e-2, rtol=2e-2), float(jnp.max(jnp.abs(out - ref)))

    print("KERNEL_OK")
</pallas_src>

<mosaic_0001>
module attributes {stable_mosaic.version = 11 : i64} {
  func.func @_patch_embed_kernel(%arg0: i32, %arg1: i32, %arg2: memref<16x512xbf16, #tpu.memory_space<vmem>>, %arg3: memref<512x128xbf16, #tpu.memory_space<vmem>>, %arg4: memref<1x128xf32, #tpu.memory_space<vmem>>, %arg5: memref<16x128xf32, #tpu.memory_space<vmem>>) attributes {dimension_semantics = [#tpu.dimension_semantics<parallel>, #tpu.dimension_semantics<parallel>], iteration_bounds = array<i64: 1, 1>, scalar_prefetch = 0 : i64, scratch_operands = 0 : i64, tpu.core_type = #tpu.core_type<tc>, window_params = [{transform_indices = @transform_0, window_bounds = array<i64: 16, 512>}, {transform_indices = @transform_1, window_bounds = array<i64: 512, 128>}, {transform_indices = @transform_2, window_bounds = array<i64: 1, 128>}, {transform_indices = @transform_3, window_bounds = array<i64: 16, 128>}]} {
    %c0 = arith.constant 0 : index
    %c0_0 = arith.constant 0 : index
    %0 = vector.load %arg2[%c0, %c0_0] : memref<16x512xbf16, #tpu.memory_space<vmem>>, vector<16x512xbf16>
    %c0_1 = arith.constant 0 : index
    %c0_2 = arith.constant 0 : index
    %1 = vector.load %arg3[%c0_1, %c0_2] : memref<512x128xbf16, #tpu.memory_space<vmem>>, vector<512x128xbf16>
    %cst = arith.constant dense<0.000000e+00> : vector<16x128xf32>
    %2 = tpu.matmul %0, %1, %cst {dimension_numbers = #tpu.dot_dimension_numbers<[1], [0], [0], [1], [0, 0, 1, 1], [], []>} : vector<16x512xbf16>, vector<512x128xbf16>, vector<16x128xf32> -> vector<16x128xf32>
    %c0_3 = arith.constant 0 : index
    %c0_4 = arith.constant 0 : index
    %3 = vector.load %arg4[%c0_3, %c0_4] : memref<1x128xf32, #tpu.memory_space<vmem>>, vector<1x128xf32>
    %4 = vector.broadcast %3 : vector<1x128xf32> to vector<16x128xf32>
    %5 = arith.addf %2, %4 : vector<16x128xf32>
    %c0_5 = arith.constant 0 : index
    %c0_6 = arith.constant 0 : index
    %6 = vector.load %arg5[%c0_5, %c0_6] : memref<16x128xf32, #tpu.memory_space<vmem>>, vector<16x128xf32>
    tpu.vector_store %arg5[%c0_5, %c0_6], %5 {strides = array<i32>} : memref<16x128xf32, #tpu.memory_space<vmem>>, vector<16x128xf32>,
    return
  }
  func.func @transform_0(%arg0: i32, %arg1: i32) -> (i32, i32) {
    %c0_i32 = arith.constant 0 : i32
    %c0_i32_0 = arith.constant 0 : i32
    return %arg0, %c0_i32 : i32, i32
  }
  func.func @transform_1(%arg0: i32, %arg1: i32) -> (i32, i32) {
    %c0_i32 = arith.constant 0 : i32
    %c0_i32_0 = arith.constant 0 : i32
    return %c0_i32, %arg1 : i32, i32
  }
  func.func @transform_2(%arg0: i32, %arg1: i32) -> (i32, i32) {
    %c0_i32 = arith.constant 0 : i32
    %c0_i32_0 = arith.constant 0 : i32
    return %c0_i32, %arg1 : i32, i32
  }
  func.func @transform_3(%arg0: i32, %arg1: i32) -> (i32, i32) {
    %c0_i32 = arith.constant 0 : i32
    return %arg0, %arg1 : i32, i32
  }
}

</mosaic_0001>

<bundles_post_ra>
// kernel: patch_embedding_3d_prepared.1
= control target key start
LH: loop header
LB: loop body
LE: loop exit
PB: predicated region body
PF: predicated region fallthrough
CT: control target
= control target key end

     0   :  { %s695_s0 = inlined_call_operand.vmem [shape: bf16[16,512], index: 0, kind: input, shape index: {}]   ;;  %s696_s1 = inlined_call_operand.vmem [shape: bf16[512,128], index: 1, kind: input, shape index: {}]   ;;  %s697_s2 = inlined_call_operand.vmem [shape: f32[1,128], index: 2, kind: input, shape index: {}]   ;;  %s698_s3 = inlined_call_operand.hbm [shape: f32[16,128], index: 3, kind: output, shape index: {}]  }
   0x1   :  { %v487_v0 = vld [vmem:[%s696_s1 + $0x40] sm:$0xff]   ;;  %v491_v4 = vld [vmem:[%s696_s1 + $0x48] sm:$0xff]   ;;  %v495_v8 = vld [vmem:[%s696_s1 + $0x50] sm:$0xff]  }
   0x2   :  { %v488_v1 = vld [vmem:[%s696_s1 + $0xc0] sm:$0xff]   ;;  %440 = vmatprep.subr.bf16.mxu0 %v487_v0  ;;  %v492_v5 = vld [vmem:[%s696_s1 + $0xc8] sm:$0xff]   ;;  %v496_v9 = vld [vmem:[%s696_s1 + $0xd0] sm:$0xff]  }
   0x3   :  { %v489_v2 = vld [vmem:[%s696_s1] sm:$0xff]   ;;  %462 = vmatprep.subr.bf16.mxu1 %v488_v1  ;;  %v493_v6 = vld [vmem:[%s696_s1 + $0x8] sm:$0xff]   ;;  %v497_v10 = vld [vmem:[%s696_s1 + $0x10] sm:$0xff]  }
   0x4   :  { %v490_v3 = vld [vmem:[%s696_s1 + $0x80] sm:$0xff]   ;;  %441 = vmatpush3.bf16.msra.mxu0 %v489_v2  ;;  %v494_v7 = vld [vmem:[%s696_s1 + $0x88] sm:$0xff]   ;;  %v498_v11 = vld [vmem:[%s696_s1 + $0x90] sm:$0xff]  }
   0x5   :  { %463 = vmatpush3.bf16.msra.mxu1 %v490_v3  ;;  %442 = vmatprep.subr.bf16.mxu0 %v491_v4  ;;  %v499_v12 = vld [vmem:[%s696_s1 + $0x58] sm:$0xff]   ;;  %v503_v16 = vld [vmem:[%s696_s1 + $0x60] sm:$0xff]   ;;  %v507_v20 = vld [vmem:[%s696_s1 + $0x68] sm:$0xff]  }
   0x6   :  { %464 = vmatprep.subr.bf16.mxu1 %v492_v5  ;;  %v500_v13 = vld [vmem:[%s696_s1 + $0xd8] sm:$0xff]   ;;  %v504_v17 = vld [vmem:[%s696_s1 + $0xe0] sm:$0xff]   ;;  %v508_v21 = vld [vmem:[%s696_s1 + $0xe8] sm:$0xff]  }
   0x7   :  { %v501_v14 = vld [vmem:[%s696_s1 + $0x18] sm:$0xff]   ;;  %v505_v18 = vld [vmem:[%s696_s1 + $0x20] sm:$0xff]   ;;  %v509_v22 = vld [vmem:[%s696_s1 + $0x28] sm:$0xff]  }
   0x8   :  { %443 = vmatpush3.bf16.msra.mxu0 %v493_v6  ;;  %v502_v15 = vld [vmem:[%s696_s1 + $0x98] sm:$0xff]   ;;  %v506_v19 = vld [vmem:[%s696_s1 + $0xa0] sm:$0xff]   ;;  %v510_v23 = vld [vmem:[%s696_s1 + $0xa8] sm:$0xff]  }
   0x9   :  { %465 = vmatpush3.bf16.msra.mxu1 %v494_v7  ;;  %444 = vmatprep.subr.bf16.mxu0 %v495_v8  ;;  %v511_v24 = vld [vmem:[%s696_s1 + $0x70] sm:$0xff]   ;;  %v515_v28 = vld [vmem:[%s696_s1 + $0x78] sm:$0xff]  }
   0xa   :  { %466 = vmatprep.subr.bf16.mxu1 %v496_v9  ;;  %v512_v25 = vld [vmem:[%s696_s1 + $0xf0] sm:$0xff]   ;;  %v516_v29 = vld [vmem:[%s696_s1 + $0xf8] sm:$0xff]  }
   0xb   :  { %v513_v26 = vld [vmem:[%s696_s1 + $0x30] sm:$0xff]   ;;  %v517_v30 = vld [vmem:[%s696_s1 + $0x38] sm:$0xff]  }
   0xc   :  { %445 = vmatpush3.bf16.msra.mxu0 %v497_v10  ;;  %v514_v27 = vld [vmem:[%s696_s1 + $0xb0] sm:$0xff]   ;;  %v518_v31 = vld [vmem:[%s696_s1 + $0xb8] sm:$0xff]  }
   0xd   :  { %467 = vmatpush3.bf16.msra.mxu1 %v498_v11  ;;  %446 = vmatprep.subr.bf16.mxu0 %v499_v12  ;;  %v519_v32 = vld [vmem:[%s695_s0] ss:$16 sps:$4 sm:$0xff]   ;;  %v521_v33 = vld [vmem:[%s695_s0 + $0x4] ss:$16 sps:$4 sm:$0xff]   ;;  %v522_v34 = vld [vmem:[%s695_s0 + $0x8] ss:$16 sps:$4 sm:$0xff]  }
   0xe   :  { %468 = vmatprep.subr.bf16.mxu1 %v500_v13  ;;  %v524_v35 = vld [vmem:[%s695_s0 + $0xc] ss:$16 sps:$4 sm:$0xff]  }
  0x10   :  { %447 = vmatpush3.bf16.msra.mxu0 %v501_v14 }
  0x11   :  { %469 = vmatpush3.bf16.msra.mxu1 %v502_v15  ;;  %448 = vmatprep.subr.bf16.mxu0 %v503_v16 }
  0x12   :  { %470 = vmatprep.subr.bf16.mxu1 %v504_v17 }
  0x14   :  { %449 = vmatpush3.bf16.msra.mxu0 %v505_v18 }
  0x15   :  { %471 = vmatpush3.bf16.msra.mxu1 %v506_v19  ;;  %450 = vmatprep.subr.bf16.mxu0 %v507_v20 }
  0x16   :  { %472 = vmatprep.subr.bf16.mxu1 %v508_v21 }
  0x18   :  { %451 = vmatpush3.bf16.msra.mxu0 %v509_v22 }
  0x19   :  { %473 = vmatpush3.bf16.msra.mxu1 %v510_v23  ;;  %452 = vmatprep.subr.bf16.mxu0 %v511_v24 }
  0x1a   :  { %474 = vmatprep.subr.bf16.mxu1 %v512_v25 }
  0x1c   :  { %453 = vmatpush3.bf16.msra.mxu0 %v513_v26 }
  0x1d   :  { %475 = vmatpush3.bf16.msra.mxu1 %v514_v27  ;;  %454 = vmatprep.subr.bf16.mxu0 %v515_v28 }
  0x1e   :  { %476 = vmatprep.subr.bf16.mxu1 %v516_v29 }
  0x20   :  { %455 = vmatpush3.bf16.msra.mxu0 %v517_v30 }
  0x21   :  { %477 = vmatpush3.bf16.msra.mxu1 %v518_v31 }
  0x22   :  { %8 = vsyncpa [#allocation3], 0  ;;  %335 = vmatprep.mubr.bf16.mxu0 %v521_v33  ;;  %376 = vmatprep.mubr.bf16.mxu1 %v524_v35  ;;  %v403_v38 = vld [vmem:[%s697_s2] ss:$0 sm:$0xff]  ;;  %s549_s0 = smov [#allocation2]  }
  0x23   :  { %336 = vmatmul.mubr.bf16.vlgmr.msra.gmra.mrb[0].mxu0 %v519_v32  ;;  %s392_s4 = sshll.u32 %s549_s0, 4  ;;  %s393_s4 = int_to_ptr.vmem [resolvable:$true] %s392_s4 }
  0x24   :  { %377 = vmatmul.mubr.bf16.vlgmr.msra.gmra.mrb[0].mxu1 %v522_v34  ;;  %s525_s2 = scalar_lea.vmem %s393_s4, 256  ;;  %p530_p1 = scmp.lt.s32.totalorder %s393_s4, %s393_s4 }
  0x25   :  { %p526_p0 = scmp.ne.s32.totalorder %s393_s4, %s525_s2  ;;  %p531_p2 = scmp.lt.s32.totalorder %s525_s2, %s525_s2 }
  0x27   :  { %p532_p3 = por %p531_p2, %p530_p1 }
  0x29   :  { %p533_p4 = pnand %p532_p3, %p526_p0 }
  0xf6   :  { %v456_v36 = vpop.f32.mrb[0].mxu0 }
  0xf7   :  { %v478_v37 = vpop.f32.mrb[0].mxu1  ;;  %v457_v39 = vpop.f32.mrb[1].mxu0 }
  0xf8   :  { %v458_v40 = vadd.f32 %v457_v39, %v456_v36  ;;  %v479_v41 = vpop.f32.mrb[1].mxu1  ;;  %v459_v42 = vpop.f32.mrb[2].mxu0 }
  0xf9   :  { %v480_v43 = vadd.f32 %v479_v41, %v478_v37  ;;  %v481_v44 = vpop.f32.mrb[2].mxu1  ;;  %v460_v45 = vpop.f32.mrb[3].mxu0 }
  0xfa   :  { %v338_v46 = vadd.f32 %v458_v40, %v403_v38  ;;  %v461_v47 = vadd.f32 %v460_v45, %v459_v42  ;;  %v482_v48 = vpop.f32.mrb[3].mxu1 }
  0xfb   :  { %v483_v49 = vadd.f32 %v482_v48, %v481_v44 }
  0xfc   :  { %v379_v50 = vadd.f32 %v480_v43, %v338_v46  ;;  %v341_v51 = vadd.f32 %v461_v47, %v403_v38 }
  0xfe   :  { %385 = vst [vmem:[#allocation2] sm:$0xff] %v379_v50  ;;  %v382_v52 = vadd.f32 %v483_v49, %v341_v51 }
 0x100   :  { %386 = vst [vmem:[#allocation2 + $0x8] sm:$0xff] %v382_v52 }
 0x101   :  { %536 = shalt.err (!%p533_p4)
}
 0x102   :  { %s537_s7 = scalar_lea.hbm %s698_s3, 256 }
 0x103   :  { %p538_p5 = scmp.ne.s32.totalorder %s698_s3, %s537_s7  ;;  %p541_p6 = scmp.lt.u32.totalorder %s537_s7, %s698_s3 }
 0x105   :  { %p543_p7 = pnand %p541_p6, %p538_p5 }
 0x107   :  { %546 = shalt.err (!%p543_p7)
}
 0x108   :  { %s550_s12 = smov 128   ;;  %s551_s13 = smov 8  }
 0x109   :  { %398 = dma.vmem_to_hbm [thread:$0]  %s393_s4, 256, %s698_s3, [#allocation3], %s550_s12, %s550_s12, %s551_s13  }
 0x10a   :  { %547 = dma.done.wait [#allocation3], 256  }
 0x10b   :  { %548 = vsyncadd [#allocation3], 4294967040 }
 0x10c   :  { %402 = vsyncpa [#allocation3], 1 }

</bundles_post_ra>
